<compile_context>
chip_gen: v5e
topology: v5e:2x2
jax: 0.10.0
libtpu: 0.0.40
codegen_flags: <defaults>
</compile_context>

<pallas_src>
import jax
import jax.numpy as jnp
from jax.experimental import pallas as pl
from jax.experimental.pallas import tpu as pltpu

LANE = 128      # vreg lane width
SUBLANE = 8     # f32 sublane count
HIDDEN = 10     # hidden units of the Bayesian MLP


def _bayes_mlp_kernel(p_ref, x_ref, out_ref):
    """p_ref: (3, 16, 128) packed [mu, log_sigma, eps] slabs (VMEM, resident).
       x_ref / out_ref: (block_rows, 128) lane-dense batch tiles."""
    # Reparameterization trick, vectorized over one (16,128) slab (2 vregs):
    #   sampled = mu + exp(log_sigma) * eps
    sampled = p_ref[0] + jnp.exp(p_ref[1]) * p_ref[2]          # (16, 128)

    x = x_ref[...]                                             # (R, 128)

    # out[n] = b2 + sum_j w2[j] * tanh(w1[j] * x[n] + b1[j])
    # Column layout inside `sampled`: col 0 = w1, col 1 = b1, col 2 = w2
    # (rows 0..9), and [0, 3] = b2.  Pure VPU broadcast FMA + EUP tanh below.
    acc = jnp.zeros_like(x)
    for j in range(HIDDEN):                                    # static unroll
        w1_j = sampled[j:j + 1, 0:1]                           # (1, 1) splat
        b1_j = sampled[j:j + 1, 1:2]
        w2_j = sampled[j:j + 1, 2:3]
        acc = acc + w2_j * jnp.tanh(w1_j * x + b1_j)
    out_ref[...] = acc + sampled[0:1, 3:4]                     # + b2


def _pack_params(params):
    """Pack the 12 tiny parameter arrays into one (3, 16, 128) f32 buffer.

    Slab s in {mu, log_sigma, eps}:  s[0:10, 0] = w1, s[0:10, 1] = b1,
    s[0:10, 2] = w2 (transposed row), s[0, 3] = b2.  Unused slots are zero
    (exp(0) * 0 = 0 and are never read)."""
    def slab(w1, b1, w2, b2):
        s = jnp.zeros((2 * SUBLANE, LANE), jnp.float32)
        s = s.at[0:HIDDEN, 0].set(jnp.reshape(w1, (HIDDEN,)).astype(jnp.float32))
        s = s.at[0:HIDDEN, 1].set(jnp.reshape(b1, (HIDDEN,)).astype(jnp.float32))
        s = s.at[0:HIDDEN, 2].set(jnp.reshape(w2, (HIDDEN,)).astype(jnp.float32))
        s = s.at[0, 3].set(jnp.reshape(b2, ()).astype(jnp.float32))
        return s

    return jnp.stack(
        [
            slab(params["w1_mu"], params["b1_mu"], params["w2_mu"], params["b2_mu"]),
            slab(params["w1_log_sigma"], params["b1_log_sigma"],
                 params["w2_log_sigma"], params["b2_log_sigma"]),
            slab(params["w1_eps"], params["b1_eps"], params["w2_eps"], params["b2_eps"]),
        ],
        axis=0,
    )  # (3, 16, 128) -> a single DMA / single resident VMEM block


def bayesian_net_forward(x, params, block_rows=64):
    """x: (N, 1) float32 -> (N, 1) float32 Bayesian-MLP forward."""
    n = x.shape[0]
    packed = _pack_params(params)

    # Lane-dense re-layout: flatten, zero-pad to whole (block_rows, 128) tiles.
    rows = -(-n // LANE)
    block_rows = min(block_rows, -(-rows // SUBLANE) * SUBLANE)
    rows_pad = -(-rows // block_rows) * block_rows
    x_dense = (
        jnp.zeros((rows_pad * LANE,), jnp.float32)
        .at[:n]
        .set(x.reshape(-1).astype(jnp.float32))
        .reshape(rows_pad, LANE)
    )

    grid = (rows_pad // block_rows,)
    n_elems = rows_pad * LANE
    cost = pl.CostEstimate(
        flops=5 * HIDDEN * n_elems,             # ~5 VPU flops per hidden unit per sample
        transcendentals=HIDDEN * n_elems,       # one tanh per hidden unit per sample
        bytes_accessed=8 * n_elems + int(packed.size) * 4,
    )

    out_dense = pl.pallas_call(
        _bayes_mlp_kernel,
        out_shape=jax.ShapeDtypeStruct((rows_pad, LANE), jnp.float32),
        grid_spec=pltpu.PrefetchScalarGridSpec(
            num_scalar_prefetch=0,
            grid=grid,
            in_specs=[
                pl.BlockSpec((3, 2 * SUBLANE, LANE), lambda i: (0, 0, 0)),  # packed params
                pl.BlockSpec((block_rows, LANE), lambda i: (i, 0)),         # batch tile
            ],
            out_specs=pl.BlockSpec((block_rows, LANE), lambda i: (i, 0)),
        ),
        compiler_params=pltpu.CompilerParams(
            dimension_semantics=("parallel",),   # shard batch tiles across TCs (v7x)
        ),
        cost_estimate=cost,
    )(packed, x_dense)

    # Drop padded lanes before they can reach the caller, restore (N, 1).
    return out_dense.reshape(-1)[:n].reshape(n, 1)


def make_params(key):
    """Deterministic synthetic parameters matching torchbnn.BayesLinear shapes."""
    in1, out1 = 1, 10
    in2, out2 = 10, 1
    keys = jax.random.split(key, 8)
    log_sigma0 = jnp.log(jnp.float32(0.1))       # prior_sigma = 0.1
    return {
        "w1_mu": jax.random.uniform(keys[0], (out1, in1), jnp.float32, -1.0, 1.0),
        "w1_log_sigma": jnp.full((out1, in1), log_sigma0, jnp.float32),
        "w1_eps": jax.random.normal(keys[1], (out1, in1), jnp.float32),
        "b1_mu": jax.random.uniform(keys[2], (1, out1), jnp.float32, -1.0, 1.0),
        "b1_log_sigma": jnp.full((1, out1), log_sigma0, jnp.float32),
        "b1_eps": jax.random.normal(keys[3], (1, out1), jnp.float32),
        "w2_mu": jax.random.uniform(keys[4], (out2, in2), jnp.float32, -0.3, 0.3),
        "w2_log_sigma": jnp.full((out2, in2), log_sigma0, jnp.float32),
        "w2_eps": jax.random.normal(keys[5], (out2, in2), jnp.float32),
        "b2_mu": jax.random.uniform(keys[6], (1, out2), jnp.float32, -0.3, 0.3),
        "b2_log_sigma": jnp.full((1, out2), log_sigma0, jnp.float32),
        "b2_eps": jax.random.normal(keys[7], (1, out2), jnp.float32),
    }


def _reference_forward(x, p):
    w1 = p["w1_mu"] + jnp.exp(p["w1_log_sigma"]) * p["w1_eps"]
    b1 = p["b1_mu"] + jnp.exp(p["b1_log_sigma"]) * p["b1_eps"]
    w2 = p["w2_mu"] + jnp.exp(p["w2_log_sigma"]) * p["w2_eps"]
    b2 = p["b2_mu"] + jnp.exp(p["b2_log_sigma"]) * p["b2_eps"]
    z = jnp.tanh(x @ w1.T + b1)
    return z @ w2.T + b2


if __name__ == "__main__":
    key = jax.random.PRNGKey(0)
    k_x, k_p = jax.random.split(key)

    N = 200  # batch of scalar inputs, as implied by x = torch.unsqueeze(x, dim=1)
    x = jax.random.normal(k_x, (N, 1), jnp.float32)
    params = make_params(k_p)

    out = jax.block_until_ready(bayesian_net_forward(x, params))
    ref = _reference_forward(x, params)

    assert out.shape == (N, 1)
    err = float(jnp.max(jnp.abs(out - ref)))
    assert jnp.allclose(out, ref, atol=1e-4, rtol=1e-4), f"max |diff| = {err}"

    print("KERNEL_OK")
</pallas_src>

<mosaic_0001>
module attributes {stable_mosaic.version = 11 : i64} {
  func.func @_bayes_mlp_kernel(%arg0: i32, %arg1: memref<3x16x128xf32, #tpu.memory_space<vmem>>, %arg2: memref<8x128xf32, #tpu.memory_space<vmem>>, %arg3: memref<8x128xf32, #tpu.memory_space<vmem>>) attributes {dimension_semantics = [#tpu.dimension_semantics<parallel>], iteration_bounds = array<i64: 1>, scalar_prefetch = 0 : i64, scratch_operands = 0 : i64, tpu.core_type = #tpu.core_type<tc>, window_params = [{pipeline_mode = #tpu.pipeline_mode<synchronous>, transform_indices = @transform_0, window_bounds = array<i64: 3, 16, 128>}, {transform_indices = @transform_1, window_bounds = array<i64: 8, 128>}, {transform_indices = @transform_2, window_bounds = array<i64: 8, 128>}]} {
    %c0 = arith.constant 0 : index
    %c0_0 = arith.constant 0 : index
    %c0_1 = arith.constant 0 : index
    %0 = vector.load %arg1[%c0, %c0_0, %c0_1] : memref<3x16x128xf32, #tpu.memory_space<vmem>>, vector<1x16x128xf32>
    %1 = vector.shape_cast %0 : vector<1x16x128xf32> to vector<16x128xf32>
    %c1 = arith.constant 1 : index
    %c0_2 = arith.constant 0 : index
    %c0_3 = arith.constant 0 : index
    %2 = vector.load %arg1[%c1, %c0_2, %c0_3] : memref<3x16x128xf32, #tpu.memory_space<vmem>>, vector<1x16x128xf32>
    %3 = vector.shape_cast %2 : vector<1x16x128xf32> to vector<16x128xf32>
    %4 = math.exp %3 : vector<16x128xf32>
    %c2 = arith.constant 2 : index
    %c0_4 = arith.constant 0 : index
    %c0_5 = arith.constant 0 : index
    %5 = vector.load %arg1[%c2, %c0_4, %c0_5] : memref<3x16x128xf32, #tpu.memory_space<vmem>>, vector<1x16x128xf32>
    %6 = vector.shape_cast %5 : vector<1x16x128xf32> to vector<16x128xf32>
    %7 = arith.mulf %4, %6 : vector<16x128xf32>
    %8 = arith.addf %1, %7 : vector<16x128xf32>
    %c0_6 = arith.constant 0 : index
    %c0_7 = arith.constant 0 : index
    %9 = vector.load %arg2[%c0_6, %c0_7] : memref<8x128xf32, #tpu.memory_space<vmem>>, vector<8x128xf32>
    %cst = arith.constant 0.000000e+00 : f32
    %10 = vector.broadcast %cst : f32 to vector<8x128xf32>
    %11 = vector.extract_strided_slice %8 {offsets = [0, 0], sizes = [1, 1], strides = [1, 1]} : vector<16x128xf32> to vector<1x1xf32>
    %12 = vector.extract_strided_slice %8 {offsets = [0, 1], sizes = [1, 1], strides = [1, 1]} : vector<16x128xf32> to vector<1x1xf32>
    %13 = vector.extract_strided_slice %8 {offsets = [0, 2], sizes = [1, 1], strides = [1, 1]} : vector<16x128xf32> to vector<1x1xf32>
    %14 = vector.broadcast %11 : vector<1x1xf32> to vector<8x128xf32>
    %15 = arith.mulf %14, %9 : vector<8x128xf32>
    %16 = vector.broadcast %12 : vector<1x1xf32> to vector<8x128xf32>
    %17 = arith.addf %15, %16 : vector<8x128xf32>
    %18 = math.tanh %17 : vector<8x128xf32>
    %19 = vector.broadcast %13 : vector<1x1xf32> to vector<8x128xf32>
    %20 = arith.mulf %19, %18 : vector<8x128xf32>
    %21 = arith.addf %10, %20 : vector<8x128xf32>
    %22 = vector.extract_strided_slice %8 {offsets = [1, 0], sizes = [1, 1], strides = [1, 1]} : vector<16x128xf32> to vector<1x1xf32>
    %23 = vector.extract_strided_slice %8 {offsets = [1, 1], sizes = [1, 1], strides = [1, 1]} : vector<16x128xf32> to vector<1x1xf32>
    %24 = vector.extract_strided_slice %8 {offsets = [1, 2], sizes = [1, 1], strides = [1, 1]} : vector<16x128xf32> to vector<1x1xf32>
    %25 = vector.broadcast %22 : vector<1x1xf32> to vector<8x128xf32>
    %26 = arith.mulf %25, %9 : vector<8x128xf32>
    %27 = vector.broadcast %23 : vector<1x1xf32> to vector<8x128xf32>
    %28 = arith.addf %26, %27 : vector<8x128xf32>
    %29 = math.tanh %28 : vector<8x128xf32>
    %30 = vector.broadcast %24 : vector<1x1xf32> to vector<8x128xf32>
    %31 = arith.mulf %30, %29 : vector<8x128xf32>
    %32 = arith.addf %21, %31 : vector<8x128xf32>
    %33 = vector.extract_strided_slice %8 {offsets = [2, 0], sizes = [1, 1], strides = [1, 1]} : vector<16x128xf32> to vector<1x1xf32>
    %34 = vector.extract_strided_slice %8 {offsets = [2, 1], sizes = [1, 1], strides = [1, 1]} : vector<16x128xf32> to vector<1x1xf32>
    %35 = vector.extract_strided_slice %8 {offsets = [2, 2], sizes = [1, 1], strides = [1, 1]} : vector<16x128xf32> to vector<1x1xf32>
    %36 = vector.broadcast %33 : vector<1x1xf32> to vector<8x128xf32>
    %37 = arith.mulf %36, %9 : vector<8x128xf32>
    %38 = vector.broadcast %34 : vector<1x1xf32> to vector<8x128xf32>
    %39 = arith.addf %37, %38 : vector<8x128xf32>
    %40 = math.tanh %39 : vector<8x128xf32>
    %41 = vector.broadcast %35 : vector<1x1xf32> to vector<8x128xf32>
    %42 = arith.mulf %41, %40 : vector<8x128xf32>
    %43 = arith.addf %32, %42 : vector<8x128xf32>
    %44 = vector.extract_strided_slice %8 {offsets = [3, 0], sizes = [1, 1], strides = [1, 1]} : vector<16x128xf32> to vector<1x1xf32>
    %45 = vector.extract_strided_slice %8 {offsets = [3, 1], sizes = [1, 1], strides = [1, 1]} : vector<16x128xf32> to vector<1x1xf32>
    %46 = vector.extract_strided_slice %8 {offsets = [3, 2], sizes = [1, 1], strides = [1, 1]} : vector<16x128xf32> to vector<1x1xf32>
    %47 = vector.broadcast %44 : vector<1x1xf32> to vector<8x128xf32>
    %48 = arith.mulf %47, %9 : vector<8x128xf32>
    %49 = vector.broadcast %45 : vector<1x1xf32> to vector<8x128xf32>
    %50 = arith.addf %48, %49 : vector<8x128xf32>
    %51 = math.tanh %50 : vector<8x128xf32>
    %52 = vector.broadcast %46 : vector<1x1xf32> to vector<8x128xf32>
    %53 = arith.mulf %52, %51 : vector<8x128xf32>
    %54 = arith.addf %43, %53 : vector<8x128xf32>
    %55 = vector.extract_strided_slice %8 {offsets = [4, 0], sizes = [1, 1], strides = [1, 1]} : vector<16x128xf32> to vector<1x1xf32>
    %56 = vector.extract_strided_slice %8 {offsets = [4, 1], sizes = [1, 1], strides = [1, 1]} : vector<16x128xf32> to vector<1x1xf32>
    %57 = vector.extract_strided_slice %8 {offsets = [4, 2], sizes = [1, 1], strides = [1, 1]} : vector<16x128xf32> to vector<1x1xf32>
    %58 = vector.broadcast %55 : vector<1x1xf32> to vector<8x128xf32>
    %59 = arith.mulf %58, %9 : vector<8x128xf32>
    %60 = vector.broadcast %56 : vector<1x1xf32> to vector<8x128xf32>
    %61 = arith.addf %59, %60 : vector<8x128xf32>
    %62 = math.tanh %61 : vector<8x128xf32>
    %63 = vector.broadcast %57 : vector<1x1xf32> to vector<8x128xf32>
    %64 = arith.mulf %63, %62 : vector<8x128xf32>
    %65 = arith.addf %54, %64 : vector<8x128xf32>
    %66 = vector.extract_strided_slice %8 {offsets = [5, 0], sizes = [1, 1], strides = [1, 1]} : vector<16x128xf32> to vector<1x1xf32>
    %67 = vector.extract_strided_slice %8 {offsets = [5, 1], sizes = [1, 1], strides = [1, 1]} : vector<16x128xf32> to vector<1x1xf32>
    %68 = vector.extract_strided_slice %8 {offsets = [5, 2], sizes = [1, 1], strides = [1, 1]} : vector<16x128xf32> to vector<1x1xf32>
    %69 = vector.broadcast %66 : vector<1x1xf32> to vector<8x128xf32>
    %70 = arith.mulf %69, %9 : vector<8x128xf32>
    %71 = vector.broadcast %67 : vector<1x1xf32> to vector<8x128xf32>
    %72 = arith.addf %70, %71 : vector<8x128xf32>
    %73 = math.tanh %72 : vector<8x128xf32>
    %74 = vector.broadcast %68 : vector<1x1xf32> to vector<8x128xf32>
    %75 = arith.mulf %74, %73 : vector<8x128xf32>
    %76 = arith.addf %65, %75 : vector<8x128xf32>
    %77 = vector.extract_strided_slice %8 {offsets = [6, 0], sizes = [1, 1], strides = [1, 1]} : vector<16x128xf32> to vector<1x1xf32>
    %78 = vector.extract_strided_slice %8 {offsets = [6, 1], sizes = [1, 1], strides = [1, 1]} : vector<16x128xf32> to vector<1x1xf32>
    %79 = vector.extract_strided_slice %8 {offsets = [6, 2], sizes = [1, 1], strides = [1, 1]} : vector<16x128xf32> to vector<1x1xf32>
    %80 = vector.broadcast %77 : vector<1x1xf32> to vector<8x128xf32>
    %81 = arith.mulf %80, %9 : vector<8x128xf32>
    %82 = vector.broadcast %78 : vector<1x1xf32> to vector<8x128xf32>
    %83 = arith.addf %81, %82 : vector<8x128xf32>
    %84 = math.tanh %83 : vector<8x128xf32>
    %85 = vector.broadcast %79 : vector<1x1xf32> to vector<8x128xf32>
    %86 = arith.mulf %85, %84 : vector<8x128xf32>
    %87 = arith.addf %76, %86 : vector<8x128xf32>
    %88 = vector.extract_strided_slice %8 {offsets = [7, 0], sizes = [1, 1], strides = [1, 1]} : vector<16x128xf32> to vector<1x1xf32>
    %89 = vector.extract_strided_slice %8 {offsets = [7, 1], sizes = [1, 1], strides = [1, 1]} : vector<16x128xf32> to vector<1x1xf32>
    %90 = vector.extract_strided_slice %8 {offsets = [7, 2], sizes = [1, 1], strides = [1, 1]} : vector<16x128xf32> to vector<1x1xf32>
    %91 = vector.broadcast %88 : vector<1x1xf32> to vector<8x128xf32>
    %92 = arith.mulf %91, %9 : vector<8x128xf32>
    %93 = vector.broadcast %89 : vector<1x1xf32> to vector<8x128xf32>
    %94 = arith.addf %92, %93 : vector<8x128xf32>
    %95 = math.tanh %94 : vector<8x128xf32>
    %96 = vector.broadcast %90 : vector<1x1xf32> to vector<8x128xf32>
    %97 = arith.mulf %96, %95 : vector<8x128xf32>
    %98 = arith.addf %87, %97 : vector<8x128xf32>
    %99 = vector.extract_strided_slice %8 {offsets = [8, 0], sizes = [1, 1], strides = [1, 1]} : vector<16x128xf32> to vector<1x1xf32>
    %100 = vector.extract_strided_slice %8 {offsets = [8, 1], sizes = [1, 1], strides = [1, 1]} : vector<16x128xf32> to vector<1x1xf32>
    %101 = vector.extract_strided_slice %8 {offsets = [8, 2], sizes = [1, 1], strides = [1, 1]} : vector<16x128xf32> to vector<1x1xf32>
    %102 = vector.broadcast %99 : vector<1x1xf32> to vector<8x128xf32>
    %103 = arith.mulf %102, %9 : vector<8x128xf32>
    %104 = vector.broadcast %100 : vector<1x1xf32> to vector<8x128xf32>
    %105 = arith.addf %103, %104 : vector<8x128xf32>
    %106 = math.tanh %105 : vector<8x128xf32>
    %107 = vector.broadcast %101 : vector<1x1xf32> to vector<8x128xf32>
    %108 = arith.mulf %107, %106 : vector<8x128xf32>
    %109 = arith.addf %98, %108 : vector<8x128xf32>
    %110 = vector.extract_strided_slice %8 {offsets = [9, 0], sizes = [1, 1], strides = [1, 1]} : vector<16x128xf32> to vector<1x1xf32>
    %111 = vector.extract_strided_slice %8 {offsets = [9, 1], sizes = [1, 1], strides = [1, 1]} : vector<16x128xf32> to vector<1x1xf32>
    %112 = vector.extract_strided_slice %8 {offsets = [9, 2], sizes = [1, 1], strides = [1, 1]} : vector<16x128xf32> to vector<1x1xf32>
    %113 = vector.broadcast %110 : vector<1x1xf32> to vector<8x128xf32>
    %114 = arith.mulf %113, %9 : vector<8x128xf32>
    %115 = vector.broadcast %111 : vector<1x1xf32> to vector<8x128xf32>
    %116 = arith.addf %114, %115 : vector<8x128xf32>
    %117 = math.tanh %116 : vector<8x128xf32>
    %118 = vector.broadcast %112 : vector<1x1xf32> to vector<8x128xf32>
    %119 = arith.mulf %118, %117 : vector<8x128xf32>
    %120 = arith.addf %109, %119 : vector<8x128xf32>
    %121 = vector.extract_strided_slice %8 {offsets = [0, 3], sizes = [1, 1], strides = [1, 1]} : vector<16x128xf32> to vector<1x1xf32>
    %122 = vector.broadcast %121 : vector<1x1xf32> to vector<8x128xf32>
    %123 = arith.addf %120, %122 : vector<8x128xf32>
    %c0_8 = arith.constant 0 : index
    %c0_9 = arith.constant 0 : index
    %124 = vector.load %arg3[%c0_8, %c0_9] : memref<8x128xf32, #tpu.memory_space<vmem>>, vector<8x128xf32>
    tpu.vector_store %arg3[%c0_8, %c0_9], %123 {strides = array<i32>} : memref<8x128xf32, #tpu.memory_space<vmem>>, vector<8x128xf32>,
    return
  }
  func.func @transform_0(%arg0: i32) -> (i32, i32, i32) {
    %c0_i32 = arith.constant 0 : i32
    %c0_i32_0 = arith.constant 0 : i32
    %c0_i32_1 = arith.constant 0 : i32
    %c0_i32_2 = arith.constant 0 : i32
    return %c0_i32, %c0_i32_0, %c0_i32_1 : i32, i32, i32
  }
  func.func @transform_1(%arg0: i32) -> (i32, i32) {
    %c0_i32 = arith.constant 0 : i32
    %c0_i32_0 = arith.constant 0 : i32
    return %arg0, %c0_i32 : i32, i32
  }
  func.func @transform_2(%arg0: i32) -> (i32, i32) {
    %c0_i32 = arith.constant 0 : i32
    %c0_i32_0 = arith.constant 0 : i32
    return %arg0, %c0_i32 : i32, i32
  }
}

</mosaic_0001>

<bundles_post_ra>
// kernel: tpu_custom_call.1
= control target key start
LH: loop header
LB: loop body
LE: loop exit
PB: predicated region body
PF: predicated region fallthrough
CT: control target
= control target key end

     0   :  { %7 = vsyncpa [#allocation3], 0  ;;  %s540_s0 = inlined_call_operand.hbm [shape: f32[3,16,128], index: 0, kind: input, shape index: {}]   ;;  %s541_s1 = inlined_call_operand.hbm [shape: f32[8,128], index: 1, kind: input, shape index: {}]   ;;  %s542_s2 = inlined_call_operand.hbm [shape: f32[8,128], index: 2, kind: output, shape index: {}]  }
   0x1   :  { %8 = vsyncpa [#allocation6], 0 }
   0x2   :  { %9 = vsyncpa [#allocation4], 0  ;;  %s14_s11 = sshll.u32 %s540_s0, 4  ;;  %s446_s12 = smov [#allocation2]   ;;  %s15_s11 = int_to_ptr.hbm [resolvable:$true] %s14_s11 }
   0x3   :  { %s16_s13 = sshll.u32 %s446_s12, 4  ;;  %s28_s16 = sshll.u32 %s541_s1, 4  ;;  %s17_s13 = int_to_ptr.vmem [resolvable:$true] %s16_s13  ;;  %s29_s16 = int_to_ptr.hbm [resolvable:$true] %s28_s16 }
   0x4   :  { %s447_s17 = smov 128   ;;  %s448_s18 = smov 8  }
   0x5   :  { %22 = dma.hbm_to_vmem [thread:$0]  %s15_s11, 768, %s17_s13, [#allocation3], %s447_s17, %s447_s17, %s448_s18  }
   0x6   :  { %s449_s19 = smov [#allocation5]  }
   0x7   :  { %s30_s20 = sshll.u32 %s449_s19, 4  ;;  %s31_s20 = int_to_ptr.vmem [resolvable:$true] %s30_s20 }
   0x8   :  { %33 = dma.hbm_to_vmem [thread:$0]  %s29_s16, 128, %s31_s20, [#allocation6]  }
   0x9   :  { %440 = dma.done.wait [#allocation3], 768  }
   0xa   :  { %441 = vsyncadd [#allocation3], 4294966528 }
   0xb   :  { %442 = dma.done.wait [#allocation6], 128  }
   0xc   :  { %443 = vsyncadd [#allocation6], 4294967168  ;;  %v45_v0 = vld [vmem:[#allocation2 + $0x10] sm:$0xff]  ;;  %v52_v2 = vld [vmem:[#allocation2 + $0x20] sm:$0xff]  ;;  %s450_s0 = smov 127   ;;  %s451_s1 = smov 126  }
   0xd   :  { %v47_v1 = vmul.f32 1.442695, %v45_v0  ;;  %v42_v4 = vld [vmem:[#allocation2] sm:$0xff]  ;;  %v46_v11 = vld [vmem:[#allocation2 + $0x18] sm:$0xff]  ;;  %v53_v16 = vld [vmem:[#allocation2 + $0x28] sm:$0xff]  ;;  %s452_s21 = smov 125  }
   0xe   :  { %v49_v12 = vmul.f32 1.442695, %v46_v11  ;;  %v43_v19 = vld [vmem:[#allocation2 + $0x8] sm:$0xff]  ;;  %v505_v44 = vld [vmem:[#allocation5] sm:$0xff] }
   0xf   :  { %344 = vpow2.f32 %v47_v1 }
  0x10   :  { %346 = vpow2.f32 %v49_v12 }
  0x15   :  { %v345_v3 = vpop.eup %344 }
  0x16   :  { %v54_v5 = vmul.f32 %v345_v3, %v52_v2  ;;  %v347_v15 = vpop.eup %346 }
  0x17   :  { %v55_v18 = vmul.f32 %v347_v15, %v53_v16 }
  0x18   :  { %v56_v6 = vadd.f32 %v54_v5, %v42_v4 }
  0x19   :  { %v57_v20 = vadd.f32 %v55_v18, %v43_v19 }
  0x1a   :  { %64 = vrot.lane.b32.xlu0 %v56_v6, %s450_s0  ;;  %v78_v7 = vrot.slane %v56_v6, 1  ;;  %274 = vpush %v56_v6  ;;  %v97_v8 = vrot.slane %v56_v6, 2  ;;  %v116_v9 = vrot.slane %v56_v6, 3  ;;  %v135_v10 = vrot.slane %v56_v6, 4 }
  0x1b   :  { %v154_v13 = vrot.slane %v56_v6, 5  ;;  %v173_v14 = vrot.slane %v56_v6, 6  ;;  %v192_v17 = vrot.slane %v56_v6, 7  ;;  %v230_v21 = vrot.slane %v57_v20, 1 }
  0x1c   :  { %83 = vrot.lane.b32.xlu1 %v78_v7, %s450_s0  ;;  %102 = vrot.lane.b32.xlu2 %v97_v8, %s450_s0 }
  0x22   :  { %71 = vrot.lane.b32.xlu0 %v56_v6, %s451_s1 }
  0x24   :  { %90 = vrot.lane.b32.xlu1 %v78_v7, %s451_s1  ;;  %109 = vrot.lane.b32.xlu2 %v97_v8, %s451_s1 }
  0x2a   :  { %121 = vrot.lane.b32.xlu0 %v116_v9, %s450_s0 }
  0x2c   :  { %128 = vrot.lane.b32.xlu1 %v116_v9, %s451_s1  ;;  %140 = vrot.lane.b32.xlu2 %v135_v10, %s450_s0 }
  0x32   :  { %147 = vrot.lane.b32.xlu0 %v135_v10, %s451_s1 }
  0x34   :  { %159 = vrot.lane.b32.xlu1 %v154_v13, %s450_s0  ;;  %166 = vrot.lane.b32.xlu2 %v154_v13, %s451_s1 }
  0x3a   :  { %178 = vrot.lane.b32.xlu0 %v173_v14, %s450_s0 }
  0x3c   :  { %185 = vrot.lane.b32.xlu1 %v173_v14, %s451_s1  ;;  %197 = vrot.lane.b32.xlu2 %v192_v17, %s450_s0 }
  0x42   :  { %204 = vrot.lane.b32.xlu0 %v192_v17, %s451_s1 }
  0x44   :  { %216 = vrot.lane.b32.xlu1 %v57_v20, %s450_s0  ;;  %223 = vrot.lane.b32.xlu2 %v57_v20, %s451_s1 }
  0x4a   :  { %235 = vrot.lane.b32.xlu0 %v230_v21, %s450_s0 }
  0x4b   :  { %s275_s22 = spop %274 }
  0x4c   :  { %242 = vrot.lane.b32.xlu1 %v230_v21, %s451_s1  ;;  %249 = vrot.lane.b32.xlu2 %v56_v6, %s452_s21  ;;  %v61_v45 = vstv %s275_s22 }
  0x4d   :  { %v63_v48 = vmul.f32 %v61_v45, %v505_v44 }
  0x76   :  { %v103_v22 = vpop.permute.xlu2 %102 }
  0x7e   :  { %v110_v25 = vpop.permute.xlu2 %109 }
  0x86   :  { %v141_v28 = vpop.permute.xlu2 %140 }
  0x8c   :  { %v65_v23 = vpop.permute.xlu0 %64 }
  0x8d   :  { %276 = vpush %v65_v23 }
  0x8e   :  { %v84_v24 = vpop.permute.xlu1 %83  ;;  %v167_v31 = vpop.permute.xlu2 %166 }
  0x94   :  { %v72_v26 = vpop.permute.xlu0 %71 }
  0x95   :  { %278 = vpush %v72_v26 }
  0x96   :  { %280 = vpush %v78_v7  ;;  %v91_v27 = vpop.permute.xlu1 %90  ;;  %v198_v35 = vpop.permute.xlu2 %197 }
  0x97   :  { %282 = vpush %v84_v24 }
  0x98   :  { %284 = vpush %v91_v27 }
  0x99   :  { %286 = vpush %v97_v8 }
  0x9a   :  { %288 = vpush %v103_v22 }
  0x9b   :  { %290 = vpush %v110_v25 }
  0x9c   :  { %292 = vpush %v116_v9  ;;  %v122_v29 = vpop.permute.xlu0 %121 }
  0x9d   :  { %294 = vpush %v122_v29 }
  0x9e   :  { %v129_v30 = vpop.permute.xlu1 %128  ;;  %v224_v38 = vpop.permute.xlu2 %223 }
  0x9f   :  { %296 = vpush %v129_v30 }
  0xa0   :  { %298 = vpush %v135_v10 }
  0xa1   :  { %300 = vpush %v141_v28 }
  0xa4   :  { %v148_v32 = vpop.permute.xlu0 %147 }
  0xa5   :  { %302 = vpush %v148_v32 }
  0xa6   :  { %304 = vpush %v154_v13  ;;  %v160_v33 = vpop.permute.xlu1 %159  ;;  %v250_v41 = vpop.permute.xlu2 %249 }
  0xa7   :  { %306 = vpush %v160_v33 }
  0xa8   :  { %308 = vpush %v167_v31 }
  0xa9   :  { %310 = vpush %v173_v14 }
  0xac   :  { %v179_v34 = vpop.permute.xlu0 %178 }
  0xad   :  { %312 = vpush %v179_v34 }
  0xae   :  { %v186_v36 = vpop.permute.xlu1 %185 }
  0xaf   :  { %314 = vpush %v186_v36 }
  0xb0   :  { %316 = vpush %v192_v17 }
  0xb1   :  { %318 = vpush %v198_v35 }
  0xb4   :  { %v205_v37 = vpop.permute.xlu0 %204 }
  0xb5   :  { %320 = vpush %v205_v37 }
  0xb6   :  { %322 = vpush %v57_v20  ;;  %v217_v39 = vpop.permute.xlu1 %216 }
  0xb7   :  { %324 = vpush %v217_v39 }
  0xb8   :  { %326 = vpush %v224_v38 }
  0xb9   :  { %328 = vpush %v230_v21 }
  0xbc   :  { %v236_v40 = vpop.permute.xlu0 %235 }
  0xbd   :  { %330 = vpush %v236_v40 }
  0xbe   :  { %v243_v42 = vpop.permute.xlu1 %242  ;;  %s277_s23 = spop %276 }
  0xbf   :  { %332 = vpush %v243_v42  ;;  %v67_v49 = vstv %s277_s23  ;;  %s453_s23 = smov [#allocation7]  }
  0xc0   :  { %334 = vpush %v250_v41  ;;  %v69_v55 = vadd.f32 %v67_v49, %v63_v48 }
  0xc6   :  { %s495_s24 = spop %278 }
  0xc7   :  { %s281_s25 = spop %280  ;;  %v74_v12 = vstv %s495_s24  ;;  %s261_s24 = sshll.u32 %s453_s23, 4  ;;  %s262_s24 = int_to_ptr.vmem [resolvable:$true] %s261_s24 }
  0xc8   :  { %s283_s26 = spop %282  ;;  %v80_v43 = vstv %s281_s25 }
  0xc9   :  { %s497_s27 = spop %284  ;;  %v82_v46 = vmul.f32 %v80_v43, %v505_v44  ;;  %v86_v50 = vstv %s283_s26 }
  0xca   :  { %s287_s28 = spop %286  ;;  %v93_v13 = vstv %s497_s27  ;;  %s263_s27 = sshll.u32 %s542_s2, 4  ;;  %s264_s27 = int_to_ptr.hbm [resolvable:$true] %s263_s27 }
  0xcb   :  { %s289_s29 = spop %288  ;;  %v99_v47 = vstv %s287_s28  ;;  %v88_v52 = vadd.f32 %v86_v50, %v82_v46 }
  0xcc   :  { %s499_s30 = spop %290  ;;  %v101_v53 = vmul.f32 %v99_v47, %v505_v44  ;;  %v105_v57 = vstv %s289_s29 }
  0xcd   :  { %s293_s3 = spop %292  ;;  %348 = vtanh.f32 %v88_v52  ;;  %v112_v20 = vstv %s499_s30 }
  0xce   :  { %s501_s4 = spop %294  ;;  %v118_v51 = vstv %s293_s3  ;;  %v107_v60 = vadd.f32 %v105_v57, %v101_v53  ;;  %350 = vtanh.f32 %v69_v55 }
  0xcf   :  { %v120_v56 = vmul.f32 %v118_v51, %v505_v44  ;;  %v124_v58 = vstv %s501_s4 }
  0xd0   :  { %s503_s5 = spop %296  ;;  %352 = vtanh.f32 %v107_v60 }
  0xd1   :  { %s299_s6 = spop %298  ;;  %v126_v0 = vadd.f32 %v124_v58, %v120_v56  ;;  %v131_v27 = vstv %s503_s5 }
  0xd2   :  { %s301_s7 = spop %300  ;;  %v137_v54 = vstv %s299_s6 }
  0xd3   :  { %v139_v61 = vmul.f32 %v137_v54, %v505_v44  ;;  %v143_v62 = vstv %s301_s7  ;;  %v349_v6 = vpop.eup %348  ;;  %354 = vtanh.f32 %v126_v0 }
  0xd4   :  { %v351_v11 = vpop.eup %350  ;;  %v95_v15 = vmul.f32 %v349_v6, %v93_v13 }
  0xd5   :  { %v145_v3 = vadd.f32 %v143_v62, %v139_v61  ;;  %v76_v18 = vmul.f32 %v351_v11, %v74_v12 }
  0xd6   :  { %s509_s8 = spop %302  ;;  %v353_v16 = vpop.eup %352 }
  0xd7   :  { %s305_s9 = spop %304  ;;  %356 = vtanh.f32 %v145_v3  ;;  %v96_v22 = vadd.f32 %v95_v15, %v76_v18  ;;  %v114_v23 = vmul.f32 %v353_v16, %v112_v20  ;;  %v150_v32 = vstv %s509_s8 }
  0xd8   :  { %s307_s10 = spop %306  ;;  %v156_v59 = vstv %s305_s9 }
  0xd9   :  { %s512_s11 = spop %308  ;;  %v158_v1 = vmul.f32 %v156_v59, %v505_v44  ;;  %v162_v2 = vstv %s307_s10  ;;  %v355_v19 = vpop.eup %354  ;;  %v115_v34 = vadd.f32 %v114_v23, %v96_v22 }
  0xda   :  { %s311_s12 = spop %310  ;;  %v133_v28 = vmul.f32 %v355_v19, %v131_v27  ;;  %v169_v37 = vstv %s512_s11 }
  0xdb   :  { %v175_v63 = vstv %s311_s12  ;;  %v164_v7 = vadd.f32 %v162_v2, %v158_v1 }
  0xdc   :  { %v177_v4 = vmul.f32 %v175_v63, %v505_v44  ;;  %v134_v38 = vadd.f32 %v133_v28, %v115_v34 }
  0xdd   :  { %358 = vtanh.f32 %v164_v7  ;;  %v357_v26 = vpop.eup %356 }
  0xde   :  { %s313_s13 = spop %312  ;;  %v152_v35 = vmul.f32 %v357_v26, %v150_v32 }
  0xdf   :  { %v181_v5 = vstv %s313_s13 }
  0xe0   :  { %s519_s14 = spop %314  ;;  %v183_v14 = vadd.f32 %v181_v5, %v177_v4  ;;  %v153_v45 = vadd.f32 %v152_v35, %v134_v38 }
  0xe1   :  { %s317_s15 = spop %316  ;;  %v188_v42 = vstv %s519_s14 }
  0xe2   :  { %v194_v8 = vstv %s317_s15  ;;  %s319_s16 = spop %318  ;;  %360 = vtanh.f32 %v183_v14 }
  0xe3   :  { %v196_v9 = vmul.f32 %v194_v8, %v505_v44  ;;  %v200_v10 = vstv %s319_s16  ;;  %v359_v31 = vpop.eup %358 }
  0xe4   :  { %v171_v39 = vmul.f32 %v359_v31, %v169_v37 }
  0xe5   :  { %v202_v17 = vadd.f32 %v200_v10, %v196_v9 }
  0xe6   :  { %s524_s17 = spop %320  ;;  %v172_v49 = vadd.f32 %v171_v39, %v153_v45 }
  0xe7   :  { %s323_s18 = spop %322  ;;  %362 = vtanh.f32 %v202_v17  ;;  %v207_v47 = vstv %s524_s17 }
  0xe8   :  { %v213_v21 = vstv %s323_s18  ;;  %s325_s19 = spop %324  ;;  %v361_v36 = vpop.eup %360 }
  0xe9   :  { %v215_v24 = vmul.f32 %v213_v21, %v505_v44  ;;  %v219_v25 = vstv %s325_s19  ;;  %s528_s20 = spop %326  ;;  %v190_v46 = vmul.f32 %v361_v36, %v188_v42 }
  0xea   :  { %s329_s0 = spop %328  ;;  %v226_v50 = vstv %s528_s20 }
  0xeb   :  { %v221_v29 = vadd.f32 %v219_v25, %v215_v24  ;;  %v232_v30 = vstv %s329_s0  ;;  %v191_v51 = vadd.f32 %v190_v46, %v172_v49 }
  0xec   :  { %v234_v33 = vmul.f32 %v232_v30, %v505_v44 }
  0xed   :  { %364 = vtanh.f32 %v221_v29  ;;  %v363_v41 = vpop.eup %362 }
  0xee   :  { %s331_s1 = spop %330  ;;  %v209_v44 = vmul.f32 %v363_v41, %v207_v47 }
  0xef   :  { %v238_v40 = vstv %s331_s1 }
  0xf0   :  { %v240_v43 = vadd.f32 %v238_v40, %v234_v33  ;;  %s333_s21 = spop %332  ;;  %v210_v54 = vadd.f32 %v209_v44, %v191_v51 }
  0xf1   :  { %v245_v53 = vstv %s333_s21  ;;  %s335_s22 = spop %334 }
  0xf2   :  { %366 = vtanh.f32 %v240_v43  ;;  %v252_v58 = vstv %s335_s22 }
  0xf3   :  { %v365_v48 = vpop.eup %364 }
  0xf4   :  { %v228_v52 = vmul.f32 %v365_v48, %v226_v50 }
  0xf6   :  { %v229_v56 = vadd.f32 %v228_v52, %v210_v54 }
  0xf8   :  { %v367_v55 = vpop.eup %366 }
  0xf9   :  { %v247_v57 = vmul.f32 %v367_v55, %v245_v53 }
  0xfb   :  { %v248_v59 = vadd.f32 %v247_v57, %v229_v56 }
  0xfd   :  { %v254_v60 = vadd.f32 %v252_v58, %v248_v59 }
  0xff   :  { %255 = vst [vmem:[#allocation7] sm:$0xff] %v254_v60 }
 0x100   :  { %266 = dma.vmem_to_hbm [thread:$0]  %s262_s24, 128, %s264_s27, [#allocation4]  }
 0x101   :  { %444 = dma.done.wait [#allocation4], 128  }
 0x102   :  { %445 = vsyncadd [#allocation4], 4294967168 }
 0x103   :  { %271 = vsyncpa [#allocation3], 1 }
 0x104   :  { %272 = vsyncpa [#allocation6], 1 }
 0x105   :  { %273 = vsyncpa [#allocation4], 1 }

</bundles_post_ra>
